<compile_context>
chip_gen: v7x
topology: tpu7x:2x2x1
jax: 0.10.0
libtpu: 0.0.40
codegen_flags: <defaults>
</compile_context>

<pallas_src>
import jax
import jax.numpy as jnp
from jax.experimental import pallas as pl
from jax.experimental.pallas import tpu as pltpu


# ---------------------------------------------------------------------------
# Small helpers
# ---------------------------------------------------------------------------
def _row_tiling(n_rows, tile):
    """Pick a row tile: multiple of 8 if tiled, or the full extent if small.

    Avoids any jnp.pad of the (N, C) activations; a ragged final block (when
    n_rows % tile != 0) is handled by Pallas' masked partial-block stores.
    """
    tile = max(8, (int(tile) // 8) * 8)
    if n_rows <= tile:
        return n_rows, 1            # single block == full array dim
    return tile, pl.cdiv(n_rows, tile)


def _block_diag(w):
    """(nb, bs, bs) block weights -> (nb*bs, nb*bs) block-diagonal matrix so
    that x @ W_bd == einsum('...bd,bdk->...bk', x.reshape(..., nb, bs), w)."""
    nb, bs, _ = w.shape
    eye = jnp.eye(nb, dtype=w.dtype)
    return jnp.einsum("bdk,bc->bdck", w, eye).reshape(nb * bs, nb * bs)


# ---------------------------------------------------------------------------
# Kernel 1: nn.Linear(hidden, hidden)  ->  y = x @ W^T + b   (f32, MXU)
# ---------------------------------------------------------------------------
def _linear_kernel(x_ref, w_ref, b_ref, o_ref):
    o_ref[...] = (
        jnp.dot(x_ref[...], w_ref[...], preferred_element_type=jnp.float32)
        + b_ref[...]
    )


def linear_pallas(x2d, wT, b2d, *, tm=512):
    """x2d: (N, C) f32, wT: (C, C) f32 (already transposed), b2d: (1, C) f32."""
    N, C = x2d.shape
    tm, n_row = _row_tiling(N, tm)
    # NOTE: this branch is HBM-bound at small/medium C; keep f32 I/O + f32
    # MXU operands (faithful to the PyTorch module). For C >= ~700 on v6e a
    # bf16-operand variant would add MXU headroom if the tolerance allows.
    return pl.pallas_call(
        _linear_kernel,
        out_shape=jax.ShapeDtypeStruct((N, C), jnp.float32),
        grid_spec=pltpu.PrefetchScalarGridSpec(
            num_scalar_prefetch=0,
            grid=(n_row,),
            in_specs=[
                pl.BlockSpec((tm, C), lambda i: (i, 0)),
                pl.BlockSpec((C, C), lambda i: (0, 0)),   # weight resident
                pl.BlockSpec((1, C), lambda i: (0, 0)),   # bias resident
            ],
            out_specs=pl.BlockSpec((tm, C), lambda i: (i, 0)),
        ),
        compiler_params=pltpu.CompilerParams(
            dimension_semantics=("parallel",),
            vmem_limit_bytes=32 * 1024 * 1024,
        ),
    )(x2d, wT, b2d)


# ---------------------------------------------------------------------------
# Kernel 2: Fourier-space complex 2-layer MLP (shared body for both paths).
#   inputs xr/xi: bf16, weights: bf16, biases: f32, outputs: f32
# ---------------------------------------------------------------------------
def _fourier_mlp_kernel(xr_ref, xi_ref,
                        w1r_ref, w1i_ref, w1s_ref, w2r_ref, w2i_ref,
                        b1r_ref, b1i_ref, b2r_ref, b2i_ref,
                        or_ref, oi_ref):
    dot = lambda a, b: jnp.dot(a, b, preferred_element_type=jnp.float32)

    xr = xr_ref[...]                       # bf16 (cast upstream in the wrapper)
    xi = xi_ref[...]

    # layer 1: complex matmul via 3 real matmuls (Karatsuba) + PartReLU.
    #   w1s = w1r + w1i is precomputed host-side.
    t1 = dot(xr, w1r_ref[...])
    t2 = dot(xi, w1i_ref[...])
    t3 = dot(xr + xi, w1s_ref[...])
    yr = jnp.maximum(t1 - t2 + b1r_ref[...], 0.0)
    yi = jnp.maximum(t3 - t1 - t2 + b1i_ref[...], 0.0)
    yr16 = yr.astype(jnp.bfloat16)
    yi16 = yi.astype(jnp.bfloat16)

    # layer 2 — faithful to the PyTorch module: x_real is re-bound before the
    # x_imag line, so the imag output uses the *layer-2* real output.
    zr = dot(yr16, w2r_ref[...]) - dot(yi16, w2i_ref[...]) + b2r_ref[...]
    zi = (dot(zr.astype(jnp.bfloat16), w2i_ref[...])
          + dot(yi16, w2r_ref[...]) + b2i_ref[...])

    or_ref[...] = zr
    oi_ref[...] = zi


def fourier_mlp_blockdiag(xr, xi, weights, biases, *, tn=512):
    """Small-block path (bs < 128): block-diagonal packed (C, C) weights.

    xr/xi: (N, C) bf16.  weights: 5 x (C, C) bf16.  biases: 4 x (1, C) f32.
    """
    N, C = xr.shape
    tn, n_row = _row_tiling(N, tn)
    x_spec = pl.BlockSpec((tn, C), lambda i: (i, 0))
    w_spec = pl.BlockSpec((C, C), lambda i: (0, 0))     # resident, fetched once
    b_spec = pl.BlockSpec((1, C), lambda i: (0, 0))
    zr, zi = pl.pallas_call(
        _fourier_mlp_kernel,
        out_shape=[jax.ShapeDtypeStruct((N, C), jnp.float32),
                   jax.ShapeDtypeStruct((N, C), jnp.float32)],
        grid_spec=pltpu.PrefetchScalarGridSpec(
            num_scalar_prefetch=0,
            grid=(n_row,),
            in_specs=[x_spec, x_spec] + [w_spec] * 5 + [b_spec] * 4,
            out_specs=[x_spec, x_spec],
        ),
        compiler_params=pltpu.CompilerParams(
            dimension_semantics=("parallel",),
            # this path only runs for bs < 128, so resident weights stay modest
            vmem_limit_bytes=48 * 1024 * 1024,
        ),
    )(xr, xi, *weights, *biases)
    return zr, zi


def fourier_mlp_blocked(xr, xi, weights, biases, *, tn=512):
    """Production path (bs % 128 == 0): per-block grid axis, no zero FLOPs.

    xr/xi: (N, C) bf16.  weights: 5 x (nb, bs, bs) bf16.
    biases: 4 x (nb, 1, bs) f32.
    """
    N, C = xr.shape
    nb, bs, _ = weights[0].shape
    tn, n_row = _row_tiling(N, tn)
    # Block axis outermost so each (bs, bs) weight block is DMA'd once and
    # stays VMEM-resident across all row tiles of that block.
    x_spec = pl.BlockSpec((tn, bs), lambda b, i: (i, b))
    w_spec = pl.BlockSpec((None, bs, bs), lambda b, i: (b, 0, 0))
    b_spec = pl.BlockSpec((None, 1, bs), lambda b, i: (b, 0, 0))
    zr, zi = pl.pallas_call(
        _fourier_mlp_kernel,
        out_shape=[jax.ShapeDtypeStruct((N, C), jnp.float32),
                   jax.ShapeDtypeStruct((N, C), jnp.float32)],
        grid_spec=pltpu.PrefetchScalarGridSpec(
            num_scalar_prefetch=0,
            grid=(nb, n_row),
            in_specs=[x_spec, x_spec] + [w_spec] * 5 + [b_spec] * 4,
            out_specs=[x_spec, x_spec],
        ),
        compiler_params=pltpu.CompilerParams(
            dimension_semantics=("parallel", "parallel"),
            vmem_limit_bytes=32 * 1024 * 1024,
        ),
    )(xr, xi, *weights, *biases)
    return zr, zi


# ---------------------------------------------------------------------------
# Parameter preprocessing (done once, outside the forward pass)
# ---------------------------------------------------------------------------
def prepare_afno_params(params):
    nb = params["num_blocks"]
    w1r, w1i = params["w1r"], params["w1i"]
    w2r, w2i = params["w2r"], params["w2i"]
    bs = w1r.shape[-1]
    C = nb * bs
    w1s = w1r + w1i                                  # Karatsuba sum weight (f32 add)
    blocked = (bs % 128 == 0)
    if blocked:
        weights = tuple(w.astype(jnp.bfloat16) for w in (w1r, w1i, w1s, w2r, w2i))
        biases = tuple(params[k].reshape(nb, 1, bs).astype(jnp.float32)
                       for k in ("b1r", "b1i", "b2r", "b2i"))
    else:
        weights = tuple(_block_diag(w).astype(jnp.bfloat16)
                        for w in (w1r, w1i, w1s, w2r, w2i))
        biases = tuple(params[k].reshape(1, C).astype(jnp.float32)
                       for k in ("b1r", "b1i", "b2r", "b2i"))
    prepared = dict(params)
    prepared.update(
        fourier_blocked=blocked,
        fourier_weights=weights,
        fourier_biases=biases,
        lin_b2d=params["lin_b"].reshape(1, C),
    )
    return prepared


# ---------------------------------------------------------------------------
# Full forward pass (FFT glue in plain JAX, hot paths in Pallas)
# ---------------------------------------------------------------------------
def afno_forward(x, prepared, *, tn=512, tm=512):
    B, H, W, C = x.shape

    # --- bias branch: nn.Linear on the (real) input --------------------------
    bias = linear_pallas(x.reshape(-1, C), prepared["lin_wT"],
                         prepared["lin_b2d"], tm=tm)
    bias = bias.reshape(B, H, W, C)

    # --- Fourier branch -------------------------------------------------------
    # TODO(synk): rfftn/irfftn have no Pallas/Mosaic primitive; stays in JAX.
    # The FFT is over spatial axes only, so it commutes with the channel-block
    # split -> keep the natural (B, H, Wf, C) layout, no transposes.
    Xf = jnp.fft.rfftn(x, axes=(1, 2), norm="ortho")          # (B, H, Wf, C) c64
    Wf = Xf.shape[2]
    N = B * H * Wf
    # bf16 inputs for the Fourier MLP (halves its input DMA); outputs stay f32.
    Xr = jnp.real(Xf).reshape(N, C).astype(jnp.bfloat16)
    Xi = jnp.imag(Xf).reshape(N, C).astype(jnp.bfloat16)

    mlp = fourier_mlp_blocked if prepared["fourier_blocked"] else fourier_mlp_blockdiag
    Zr, Zi = mlp(Xr, Xi, prepared["fourier_weights"], prepared["fourier_biases"],
                 tn=tn)

    Zf = jax.lax.complex(Zr, Zi).reshape(B, H, Wf, C)
    y = jnp.fft.irfftn(Zf, s=(H, W), axes=(1, 2), norm="ortho")   # (B, H, W, C)
    return y + bias


# ---------------------------------------------------------------------------
# Pure-JAX reference (mirrors the PyTorch forward exactly, f32 precision)
# ---------------------------------------------------------------------------
def afno_reference(x, params):
    B, H, W, C = x.shape
    nb = params["num_blocks"]
    bs = C // nb
    hi = jax.lax.Precision.HIGHEST

    bias = (jnp.dot(x.reshape(-1, C), params["lin_wT"], precision=hi)
            + params["lin_b"]).reshape(B, H, W, C)

    xb = x.reshape(B, H, W, nb, bs)
    Xf = jnp.fft.rfftn(xb, axes=(1, 2), norm="ortho")

    def mul(a, w):
        return jnp.einsum("...bd,bdk->...bk", a, w, precision=hi)

    xr = jnp.maximum(mul(Xf.real, params["w1r"]) - mul(Xf.imag, params["w1i"])
                     + params["b1r"], 0.0)
    xi = jnp.maximum(mul(Xf.real, params["w1i"]) + mul(Xf.imag, params["w1r"])
                     + params["b1i"], 0.0)
    # faithful to PyTorch: x_real is re-bound before the x_imag line
    xr2 = mul(xr, params["w2r"]) - mul(xi, params["w2i"]) + params["b2r"]
    xi2 = mul(xr2, params["w2i"]) + mul(xi, params["w2r"]) + params["b2i"]

    Zf = jax.lax.complex(xr2, xi2)
    y = jnp.fft.irfftn(Zf, s=(H, W), axes=(1, 2), norm="ortho")
    return y.reshape(B, H, W, C) + bias


def init_params(key, dim, fno_blocks=4):
    nb = fno_blocks
    bs = dim // nb
    scale = 0.02
    ks = jax.random.split(key, 10)
    return {
        "num_blocks": nb,
        "w1r": scale * jax.random.normal(ks[0], (nb, bs, bs), jnp.float32),
        "w1i": scale * jax.random.normal(ks[1], (nb, bs, bs), jnp.float32),
        "b1r": scale * jax.random.normal(ks[2], (nb, bs), jnp.float32),
        "b1i": scale * jax.random.normal(ks[3], (nb, bs), jnp.float32),
        "w2r": scale * jax.random.normal(ks[4], (nb, bs, bs), jnp.float32),
        "w2i": scale * jax.random.normal(ks[5], (nb, bs, bs), jnp.float32),
        "b2r": scale * jax.random.normal(ks[6], (nb, bs), jnp.float32),
        "b2i": scale * jax.random.normal(ks[7], (nb, bs), jnp.float32),
        # nn.Linear(dim, dim): weight (out, in); kernels consume W^T (in, out)
        "lin_wT": (jax.random.uniform(ks[8], (dim, dim), jnp.float32,
                                      minval=-1.0, maxval=1.0)
                   / jnp.sqrt(dim)).T,
        "lin_b": jax.random.uniform(ks[9], (dim,), jnp.float32,
                                    minval=-1.0, maxval=1.0) / jnp.sqrt(dim),
    }


if __name__ == "__main__":
    master = jax.random.PRNGKey(0)
    case_keys = jax.random.split(master, 2)

    def run_case(key, B, H, W, C, nb, tol):
        kx, kp = jax.random.split(key)
        x = jax.random.normal(kx, (B, H, W, C), jnp.float32)
        params = init_params(kp, C, fno_blocks=nb)
        prepared = prepare_afno_params(params)
        out = jax.block_until_ready(afno_forward(x, prepared))
        ref = jax.block_until_ready(afno_reference(x, params))
        assert out.shape == (B, H, W, C), out.shape
        err = float(jnp.max(jnp.abs(out - ref)))
        # bf16 MXU operands in the Fourier MLP -> tolerance looser than pure f32
        assert err < tol, (B, H, W, C, nb, err)

    # small demo config (bs = 8 < 128 -> block-diagonal packed path)
    run_case(case_keys[0], 2, 16, 16, 32, 4, 5e-3)
    # production-style path (bs = 128 -> per-block grid axis), small spatial dims
    run_case(case_keys[1], 1, 8, 8, 256, 2, 2e-2)

    print("KERNEL_OK")
</pallas_src>

<mosaic_0001>
module attributes {stable_mosaic.version = 11 : i64} {
  func.func @_linear_kernel(%arg0: i32, %arg1: memref<512x32xf32, #tpu.memory_space<vmem>>, %arg2: memref<32x32xf32, #tpu.memory_space<vmem>>, %arg3: memref<1x32xf32, #tpu.memory_space<vmem>>, %arg4: memref<512x32xf32, #tpu.memory_space<vmem>>) attributes {dimension_semantics = [#tpu.dimension_semantics<parallel>], iteration_bounds = array<i64: 1>, scalar_prefetch = 0 : i64, scratch_operands = 0 : i64, tpu.core_type = #tpu.core_type<tc>, window_params = [{transform_indices = @transform_0, window_bounds = array<i64: 512, 32>}, {pipeline_mode = #tpu.pipeline_mode<synchronous>, transform_indices = @transform_1, window_bounds = array<i64: 32, 32>}, {pipeline_mode = #tpu.pipeline_mode<synchronous>, transform_indices = @transform_2, window_bounds = array<i64: 1, 32>}, {transform_indices = @transform_3, window_bounds = array<i64: 512, 32>}]} {
    %c0 = arith.constant 0 : index
    %c0_0 = arith.constant 0 : index
    %0 = vector.load %arg1[%c0, %c0_0] : memref<512x32xf32, #tpu.memory_space<vmem>>, vector<512x32xf32>
    %c0_1 = arith.constant 0 : index
    %c0_2 = arith.constant 0 : index
    %1 = vector.load %arg2[%c0_1, %c0_2] : memref<32x32xf32, #tpu.memory_space<vmem>>, vector<32x32xf32>
    %cst = arith.constant dense<0.000000e+00> : vector<512x32xf32>
    %2 = tpu.matmul %0, %1, %cst {dimension_numbers = #tpu.dot_dimension_numbers<[1], [0], [0], [1], [0, 0, 1, 1], [], []>} : vector<512x32xf32>, vector<32x32xf32>, vector<512x32xf32> -> vector<512x32xf32>
    %c0_3 = arith.constant 0 : index
    %c0_4 = arith.constant 0 : index
    %3 = vector.load %arg3[%c0_3, %c0_4] : memref<1x32xf32, #tpu.memory_space<vmem>>, vector<1x32xf32>
    %4 = vector.broadcast %3 : vector<1x32xf32> to vector<512x32xf32>
    %5 = arith.addf %2, %4 : vector<512x32xf32>
    %c0_5 = arith.constant 0 : index
    %c0_6 = arith.constant 0 : index
    %6 = vector.load %arg4[%c0_5, %c0_6] : memref<512x32xf32, #tpu.memory_space<vmem>>, vector<512x32xf32>
    tpu.vector_store %arg4[%c0_5, %c0_6], %5 {strides = array<i32>} : memref<512x32xf32, #tpu.memory_space<vmem>>, vector<512x32xf32>,
    return
  }
  func.func @transform_0(%arg0: i32) -> (i32, i32) {
    %c0_i32 = arith.constant 0 : i32
    %c0_i32_0 = arith.constant 0 : i32
    return %arg0, %c0_i32 : i32, i32
  }
  func.func @transform_1(%arg0: i32) -> (i32, i32) {
    %c0_i32 = arith.constant 0 : i32
    %c0_i32_0 = arith.constant 0 : i32
    %c0_i32_1 = arith.constant 0 : i32
    return %c0_i32, %c0_i32_0 : i32, i32
  }
  func.func @transform_2(%arg0: i32) -> (i32, i32) {
    %c0_i32 = arith.constant 0 : i32
    %c0_i32_0 = arith.constant 0 : i32
    %c0_i32_1 = arith.constant 0 : i32
    return %c0_i32, %c0_i32_0 : i32, i32
  }
  func.func @transform_3(%arg0: i32) -> (i32, i32) {
    %c0_i32 = arith.constant 0 : i32
    %c0_i32_0 = arith.constant 0 : i32
    return %arg0, %c0_i32 : i32, i32
  }
}

</mosaic_0001>

<bundles_post_ra>
// kernel: tpu_custom_call.1
= control target key start
LH: loop header
LB: loop body
LE: loop exit
PB: predicated region body
PF: predicated region fallthrough
CT: control target
= control target key end

     0   :  { %vm89_vm0 = vcmask 261120   ;;  %s1597_s1 = inlined_call_operand.vmem [shape: f32[32,32], index: 1, kind: input, shape index: {}]   ;;  %s1598_s0 = inlined_call_operand.vmem [shape: f32[512,32], index: 0, kind: input, shape index: {}]   ;;  %s1599_s2 = inlined_call_operand.vmem [shape: f32[1,32], index: 2, kind: input, shape index: {}]   ;;  %s1600_s3 = inlined_call_operand.vmem [shape: f32[512,32], index: 3, kind: output, shape index: {}]  }
   0x1   :  { %v78_v0 = vld [vmem:[%s1597_s1] sm:$0xff]  ;;  %v79_v1 = vld [vmem:[%s1597_s1 + $0x8] sm:$0xff]  ;;  %v80_v2 = vld [vmem:[%s1597_s1 + $0x10] sm:$0xff] }
   0x2   :  { %v972_v3 = vpack.c.bf16 %v79_v1, %v78_v0  ;;  %v81_v4 = vld [vmem:[%s1597_s1 + $0x18] sm:$0xff]  ;;  %v14_v5 = vld [vmem:[%s1598_s0] sm:$0xff]  ;;  %v15_v8 = vld [vmem:[%s1598_s0 + $0x8] sm:$0xff] }
   0x3   :  { %v46_v6 = vld [vmem:[%s1598_s0 + $0x100] sm:$0xff]  ;;  %v976_v7 = vpack.c.bf16 %v81_v4, %v80_v2  ;;  %876 = vmatprep.mubr.msk.f32.mxu0 %vm89_vm0, %v14_v5  ;;  %v47_v9 = vld [vmem:[%s1598_s0 + $0x108] sm:$0xff]  ;;  %v16_v10 = vld [vmem:[%s1598_s0 + $0x10] sm:$0xff] }
   0x4   :  { %924 = vmatprep.mubr.msk.f32.mxu1 %vm89_vm0, %v46_v6  ;;  %973 = vmatprep.subr.bf16.mxu0 %v972_v3  ;;  %v48_v11 = vld [vmem:[%s1598_s0 + $0x110] sm:$0xff]  ;;  %v17_v12 = vld [vmem:[%s1598_s0 + $0x18] sm:$0xff]  ;;  %v18_v14 = vld [vmem:[%s1598_s0 + $0x20] sm:$0xff] }
   0x5   :  { %980 = vmatprep.subr.bf16.mxu1 %v972_v3  ;;  %975 = vmatpush3.bf16.msra.mxu0 %v972_v3  ;;  %v49_v13 = vld [vmem:[%s1598_s0 + $0x118] sm:$0xff]  ;;  %v50_v15 = vld [vmem:[%s1598_s0 + $0x120] sm:$0xff]  ;;  %v19_v16 = vld [vmem:[%s1598_s0 + $0x28] sm:$0xff] }
   0x6   :  { %982 = vmatpush3.bf16.msra.mxu1 %v972_v3  ;;  %977 = vmatprep.subr.bf16.mxu0 %v976_v7  ;;  %v51_v17 = vld [vmem:[%s1598_s0 + $0x128] sm:$0xff]  ;;  %v20_v18 = vld [vmem:[%s1598_s0 + $0x30] sm:$0xff]  ;;  %v21_v20 = vld [vmem:[%s1598_s0 + $0x38] sm:$0xff] }
   0x7   :  { %981 = vmatprep.subr.bf16.mxu1 %v976_v7  ;;  %v52_v19 = vld [vmem:[%s1598_s0 + $0x130] sm:$0xff]  ;;  %v53_v21 = vld [vmem:[%s1598_s0 + $0x138] sm:$0xff]  ;;  %v22_v22 = vld [vmem:[%s1598_s0 + $0x40] sm:$0xff] }
   0x8   :  { %v54_v23 = vld [vmem:[%s1598_s0 + $0x140] sm:$0xff]  ;;  %v23_v24 = vld [vmem:[%s1598_s0 + $0x48] sm:$0xff]  ;;  %v24_v26 = vld [vmem:[%s1598_s0 + $0x50] sm:$0xff] }
   0x9   :  { %979 = vmatpush3.bf16.msra.mxu0 %v976_v7  ;;  %v55_v25 = vld [vmem:[%s1598_s0 + $0x148] sm:$0xff]  ;;  %v56_v27 = vld [vmem:[%s1598_s0 + $0x150] sm:$0xff]  ;;  %v25_v28 = vld [vmem:[%s1598_s0 + $0x58] sm:$0xff] }
   0xa   :  { %983 = vmatpush3.bf16.msra.mxu1 %v976_v7  ;;  %v57_v29 = vld [vmem:[%s1598_s0 + $0x158] sm:$0xff]  ;;  %v26_v30 = vld [vmem:[%s1598_s0 + $0x60] sm:$0xff]  ;;  %v27_v32 = vld [vmem:[%s1598_s0 + $0x68] sm:$0xff] }
   0xb   :  { %v58_v31 = vld [vmem:[%s1598_s0 + $0x160] sm:$0xff]  ;;  %v59_v33 = vld [vmem:[%s1598_s0 + $0x168] sm:$0xff]  ;;  %v28_v34 = vld [vmem:[%s1598_s0 + $0x70] sm:$0xff] }
   0xc   :  { %877 = vmatmul.mubr.msk.f32.vlgmr.msra.gmra.mrb[0].mxu0 %vm89_vm0, %v15_v8  ;;  %v60_v35 = vld [vmem:[%s1598_s0 + $0x170] sm:$0xff]  ;;  %v29_v36 = vld [vmem:[%s1598_s0 + $0x78] sm:$0xff]  ;;  %v30_v38 = vld [vmem:[%s1598_s0 + $0x80] sm:$0xff] }
   0xd   :  { %925 = vmatmul.mubr.msk.f32.vlgmr.msra.gmra.mrb[0].mxu1 %vm89_vm0, %v47_v9  ;;  %879 = vmatprep.mubr.msk.f32.mxu0 %vm89_vm0, %v16_v10  ;;  %v61_v37 = vld [vmem:[%s1598_s0 + $0x178] sm:$0xff]  ;;  %v62_v39 = vld [vmem:[%s1598_s0 + $0x180] sm:$0xff]  ;;  %v31_v40 = vld [vmem:[%s1598_s0 + $0x88] sm:$0xff] }
   0xe   :  { %927 = vmatprep.mubr.msk.f32.mxu1 %vm89_vm0, %v48_v11  ;;  %v63_v41 = vld [vmem:[%s1598_s0 + $0x188] sm:$0xff]  ;;  %v32_v42 = vld [vmem:[%s1598_s0 + $0x90] sm:$0xff]  ;;  %v33_v44 = vld [vmem:[%s1598_s0 + $0x98] sm:$0xff] }
   0xf   :  { %v64_v43 = vld [vmem:[%s1598_s0 + $0x190] sm:$0xff]  ;;  %v65_v45 = vld [vmem:[%s1598_s0 + $0x198] sm:$0xff]  ;;  %v34_v46 = vld [vmem:[%s1598_s0 + $0xa0] sm:$0xff] }
  0x10   :  { %880 = vmatmul.mubr.msk.f32.gmra.mrb[2].mxu0 %vm89_vm0, %v17_v12  ;;  %v66_v47 = vld [vmem:[%s1598_s0 + $0x1a0] sm:$0xff]  ;;  %v35_v48 = vld [vmem:[%s1598_s0 + $0xa8] sm:$0xff]  ;;  %v36_v50 = vld [vmem:[%s1598_s0 + $0xb0] sm:$0xff] }
  0x11   :  { %928 = vmatmul.mubr.msk.f32.gmra.mrb[2].mxu1 %vm89_vm0, %v49_v13  ;;  %882 = vmatprep.mubr.msk.f32.mxu0 %vm89_vm0, %v18_v14  ;;  %v67_v49 = vld [vmem:[%s1598_s0 + $0x1a8] sm:$0xff]  ;;  %v68_v51 = vld [vmem:[%s1598_s0 + $0x1b0] sm:$0xff]  ;;  %v37_v52 = vld [vmem:[%s1598_s0 + $0xb8] sm:$0xff] }
  0x12   :  { %930 = vmatprep.mubr.msk.f32.mxu1 %vm89_vm0, %v50_v15  ;;  %v69_v53 = vld [vmem:[%s1598_s0 + $0x1b8] sm:$0xff]  ;;  %v38_v54 = vld [vmem:[%s1598_s0 + $0xc0] sm:$0xff]  ;;  %v39_v56 = vld [vmem:[%s1598_s0 + $0xc8] sm:$0xff] }
  0x13   :  { %v70_v55 = vld [vmem:[%s1598_s0 + $0x1c0] sm:$0xff]  ;;  %v71_v57 = vld [vmem:[%s1598_s0 + $0x1c8] sm:$0xff]  ;;  %v40_v58 = vld [vmem:[%s1598_s0 + $0xd0] sm:$0xff] }
  0x14   :  { %883 = vmatmul.mubr.msk.f32.gmra.mrb[4].mxu0 %vm89_vm0, %v19_v16  ;;  %v72_v59 = vld [vmem:[%s1598_s0 + $0x1d0] sm:$0xff]  ;;  %v41_v60 = vld [vmem:[%s1598_s0 + $0xd8] sm:$0xff]  ;;  %v42_v62 = vld [vmem:[%s1598_s0 + $0xe0] sm:$0xff] }
  0x15   :  { %931 = vmatmul.mubr.msk.f32.gmra.mrb[4].mxu1 %vm89_vm0, %v51_v17  ;;  %885 = vmatprep.mubr.msk.f32.mxu0 %vm89_vm0, %v20_v18  ;;  %v73_v61 = vld [vmem:[%s1598_s0 + $0x1d8] sm:$0xff]  ;;  %v74_v63 = vld [vmem:[%s1598_s0 + $0x1e0] sm:$0xff]  ;;  %v43_v0 = vld [vmem:[%s1598_s0 + $0xe8] sm:$0xff] }
  0x16   :  { %933 = vmatprep.mubr.msk.f32.mxu1 %vm89_vm0, %v52_v19  ;;  %v75_v1 = vld [vmem:[%s1598_s0 + $0x1e8] sm:$0xff]  ;;  %v44_v2 = vld [vmem:[%s1598_s0 + $0xf0] sm:$0xff]  ;;  %v45_v4 = vld [vmem:[%s1598_s0 + $0xf8] sm:$0xff] }
  0x17   :  { %v76_v3 = vld [vmem:[%s1598_s0 + $0x1f0] sm:$0xff]  ;;  %v77_v5 = vld [vmem:[%s1598_s0 + $0x1f8] sm:$0xff]  ;;  %v1275_v6 = vld [vmem:[%s1599_s2] ss:$0 sm:$0xff] }
  0x18   :  { %886 = vmatmul.mubr.msk.f32.gmra.mrb[6].mxu0 %vm89_vm0, %v21_v20 }
  0x19   :  { %934 = vmatmul.mubr.msk.f32.gmra.mrb[6].mxu1 %vm89_vm0, %v53_v21  ;;  %888 = vmatprep.mubr.msk.f32.mxu0 %vm89_vm0, %v22_v22 }
  0x1a   :  { %936 = vmatprep.mubr.msk.f32.mxu1 %vm89_vm0, %v54_v23 }
  0x1c   :  { %889 = vmatmul.mubr.msk.f32.gmra.mrb[8].mxu0 %vm89_vm0, %v23_v24 }
  0x1d   :  { %937 = vmatmul.mubr.msk.f32.gmra.mrb[8].mxu1 %vm89_vm0, %v55_v25  ;;  %891 = vmatprep.mubr.msk.f32.mxu0 %vm89_vm0, %v24_v26 }
  0x1e   :  { %939 = vmatprep.mubr.msk.f32.mxu1 %vm89_vm0, %v56_v27 }
  0x20   :  { %892 = vmatmul.mubr.msk.f32.gmra.mrb[10].mxu0 %vm89_vm0, %v25_v28 }
  0x21   :  { %940 = vmatmul.mubr.msk.f32.gmra.mrb[10].mxu1 %vm89_vm0, %v57_v29  ;;  %894 = vmatprep.mubr.msk.f32.mxu0 %vm89_vm0, %v26_v30 }
  0x22   :  { %942 = vmatprep.mubr.msk.f32.mxu1 %vm89_vm0, %v58_v31 }
  0x24   :  { %895 = vmatmul.mubr.msk.f32.gmra.mrb[12].mxu0 %vm89_vm0, %v27_v32 }
  0x25   :  { %943 = vmatmul.mubr.msk.f32.gmra.mrb[12].mxu1 %vm89_vm0, %v59_v33  ;;  %897 = vmatprep.mubr.msk.f32.mxu0 %vm89_vm0, %v28_v34 }
  0x26   :  { %945 = vmatprep.mubr.msk.f32.mxu1 %vm89_vm0, %v60_v35 }
  0x28   :  { %898 = vmatmul.mubr.msk.f32.gmra.mrb[14].mxu0 %vm89_vm0, %v29_v36 }
  0x29   :  { %946 = vmatmul.mubr.msk.f32.gmra.mrb[14].mxu1 %vm89_vm0, %v61_v37  ;;  %900 = vmatprep.mubr.msk.f32.mxu0 %vm89_vm0, %v30_v38 }
  0x2a   :  { %948 = vmatprep.mubr.msk.f32.mxu1 %vm89_vm0, %v62_v39 }
  0x2c   :  { %901 = vmatmul.mubr.msk.f32.gmra.mrb[16].mxu0 %vm89_vm0, %v31_v40 }
  0x2d   :  { %949 = vmatmul.mubr.msk.f32.gmra.mrb[16].mxu1 %vm89_vm0, %v63_v41  ;;  %903 = vmatprep.mubr.msk.f32.mxu0 %vm89_vm0, %v32_v42 }
  0x2e   :  { %951 = vmatprep.mubr.msk.f32.mxu1 %vm89_vm0, %v64_v43 }
  0x30   :  { %904 = vmatmul.mubr.msk.f32.gmra.mrb[18].mxu0 %vm89_vm0, %v33_v44 }
  0x31   :  { %952 = vmatmul.mubr.msk.f32.gmra.mrb[18].mxu1 %vm89_vm0, %v65_v45  ;;  %906 = vmatprep.mubr.msk.f32.mxu0 %vm89_vm0, %v34_v46 }
  0x32   :  { %954 = vmatprep.mubr.msk.f32.mxu1 %vm89_vm0, %v66_v47 }
  0x34   :  { %907 = vmatmul.mubr.msk.f32.gmra.mrb[20].mxu0 %vm89_vm0, %v35_v48 }
  0x35   :  { %955 = vmatmul.mubr.msk.f32.gmra.mrb[20].mxu1 %vm89_vm0, %v67_v49  ;;  %909 = vmatprep.mubr.msk.f32.mxu0 %vm89_vm0, %v36_v50 }
  0x36   :  { %957 = vmatprep.mubr.msk.f32.mxu1 %vm89_vm0, %v68_v51 }
  0x38   :  { %910 = vmatmul.mubr.msk.f32.gmra.mrb[22].mxu0 %vm89_vm0, %v37_v52 }
  0x39   :  { %958 = vmatmul.mubr.msk.f32.gmra.mrb[22].mxu1 %vm89_vm0, %v69_v53  ;;  %912 = vmatprep.mubr.msk.f32.mxu0 %vm89_vm0, %v38_v54 }
  0x3a   :  { %960 = vmatprep.mubr.msk.f32.mxu1 %vm89_vm0, %v70_v55 }
  0x3c   :  { %913 = vmatmul.mubr.msk.f32.gmra.mrb[24].mxu0 %vm89_vm0, %v39_v56 }
  0x3d   :  { %961 = vmatmul.mubr.msk.f32.gmra.mrb[24].mxu1 %vm89_vm0, %v71_v57  ;;  %915 = vmatprep.mubr.msk.f32.mxu0 %vm89_vm0, %v40_v58 }
  0x3e   :  { %963 = vmatprep.mubr.msk.f32.mxu1 %vm89_vm0, %v72_v59 }
  0x40   :  { %916 = vmatmul.mubr.msk.f32.gmra.mrb[26].mxu0 %vm89_vm0, %v41_v60 }
  0x41   :  { %964 = vmatmul.mubr.msk.f32.gmra.mrb[26].mxu1 %vm89_vm0, %v73_v61  ;;  %918 = vmatprep.mubr.msk.f32.mxu0 %vm89_vm0, %v42_v62 }
  0x42   :  { %966 = vmatprep.mubr.msk.f32.mxu1 %vm89_vm0, %v74_v63 }
  0x44   :  { %919 = vmatmul.mubr.msk.f32.gmra.mrb[28].mxu0 %vm89_vm0, %v43_v0 }
  0x45   :  { %967 = vmatmul.mubr.msk.f32.gmra.mrb[28].mxu1 %vm89_vm0, %v75_v1  ;;  %921 = vmatprep.mubr.msk.f32.mxu0 %vm89_vm0, %v44_v2 }
  0x46   :  { %969 = vmatprep.mubr.msk.f32.mxu1 %vm89_vm0, %v76_v3 }
  0x48   :  { %922 = vmatmul.mubr.msk.f32.gmra.mrb[30].mxu0 %vm89_vm0, %v45_v4 }
  0x49   :  { %970 = vmatmul.mubr.msk.f32.gmra.mrb[30].mxu1 %vm89_vm0, %v77_v5 }
  0xdf   :  { %v878_v7 = vpop.f32.mrb[0].mxu0 }
  0xe0   :  { %v926_v8 = vpop.f32.mrb[0].mxu1  ;;  %v354_v9 = vadd.f32 %v878_v7, %v1275_v6  ;;  %v348_v11 = vpop.f32.mrb[1].mxu0 }
  0xe1   :  { %v514_v10 = vadd.f32 %v926_v8, %v1275_v6  ;;  %v508_v12 = vpop.f32.mrb[1].mxu1  ;;  %v349_v13 = vadd.f32 %v1275_v6, %v348_v11 }
  0xe2   :  { %v509_v14 = vadd.f32 %v1275_v6, %v508_v12  ;;  %668 = vst.msk [vmem:[%s1600_s3 + $0x8] sm:$0xff] %vm89_vm0, %v354_v9 }
  0xe3   :  { %700 = vst.msk [vmem:[%s1600_s3 + $0x108] sm:$0xff] %vm89_vm0, %v514_v10  ;;  %667 = vst.msk [vmem:[%s1600_s3] sm:$0xff] %vm89_vm0, %v349_v13  ;;  %v881_v15 = vpop.f32.mrb[2].mxu0 }
  0xe4   :  { %699 = vst.msk [vmem:[%s1600_s3 + $0x100] sm:$0xff] %vm89_vm0, %v509_v14  ;;  %v929_v16 = vpop.f32.mrb[2].mxu1  ;;  %v364_v17 = vadd.f32 %v881_v15, %v1275_v6  ;;  %v358_v19 = vpop.f32.mrb[3].mxu0 }
  0xe5   :  { %v524_v18 = vadd.f32 %v929_v16, %v1275_v6  ;;  %v518_v20 = vpop.f32.mrb[3].mxu1  ;;  %v359_v21 = vadd.f32 %v1275_v6, %v358_v19 }
  0xe6   :  { %v519_v22 = vadd.f32 %v1275_v6, %v518_v20  ;;  %670 = vst.msk [vmem:[%s1600_s3 + $0x18] sm:$0xff] %vm89_vm0, %v364_v17 }
  0xe7   :  { %702 = vst.msk [vmem:[%s1600_s3 + $0x118] sm:$0xff] %vm89_vm0, %v524_v18  ;;  %669 = vst.msk [vmem:[%s1600_s3 + $0x10] sm:$0xff] %vm89_vm0, %v359_v21  ;;  %v884_v23 = vpop.f32.mrb[4].mxu0 }
  0xe8   :  { %701 = vst.msk [vmem:[%s1600_s3 + $0x110] sm:$0xff] %vm89_vm0, %v519_v22  ;;  %v932_v24 = vpop.f32.mrb[4].mxu1  ;;  %v374_v25 = vadd.f32 %v884_v23, %v1275_v6  ;;  %v368_v27 = vpop.f32.mrb[5].mxu0 }
  0xe9   :  { %v534_v26 = vadd.f32 %v932_v24, %v1275_v6  ;;  %v528_v28 = vpop.f32.mrb[5].mxu1  ;;  %v369_v29 = vadd.f32 %v1275_v6, %v368_v27 }
  0xea   :  { %v529_v30 = vadd.f32 %v1275_v6, %v528_v28  ;;  %672 = vst.msk [vmem:[%s1600_s3 + $0x28] sm:$0xff] %vm89_vm0, %v374_v25 }
  0xeb   :  { %704 = vst.msk [vmem:[%s1600_s3 + $0x128] sm:$0xff] %vm89_vm0, %v534_v26  ;;  %671 = vst.msk [vmem:[%s1600_s3 + $0x20] sm:$0xff] %vm89_vm0, %v369_v29  ;;  %v887_v31 = vpop.f32.mrb[6].mxu0 }
  0xec   :  { %703 = vst.msk [vmem:[%s1600_s3 + $0x120] sm:$0xff] %vm89_vm0, %v529_v30  ;;  %v935_v32 = vpop.f32.mrb[6].mxu1  ;;  %v384_v33 = vadd.f32 %v887_v31, %v1275_v6  ;;  %v378_v35 = vpop.f32.mrb[7].mxu0 }
  0xed   :  { %v544_v34 = vadd.f32 %v935_v32, %v1275_v6  ;;  %v538_v36 = vpop.f32.mrb[7].mxu1  ;;  %v379_v37 = vadd.f32 %v1275_v6, %v378_v35 }
  0xee   :  { %v539_v38 = vadd.f32 %v1275_v6, %v538_v36  ;;  %674 = vst.msk [vmem:[%s1600_s3 + $0x38] sm:$0xff] %vm89_vm0, %v384_v33 }
  0xef   :  { %706 = vst.msk [vmem:[%s1600_s3 + $0x138] sm:$0xff] %vm89_vm0, %v544_v34  ;;  %673 = vst.msk [vmem:[%s1600_s3 + $0x30] sm:$0xff] %vm89_vm0, %v379_v37  ;;  %v890_v39 = vpop.f32.mrb[8].mxu0 }
  0xf0   :  { %705 = vst.msk [vmem:[%s1600_s3 + $0x130] sm:$0xff] %vm89_vm0, %v539_v38  ;;  %v938_v40 = vpop.f32.mrb[8].mxu1  ;;  %v394_v41 = vadd.f32 %v890_v39, %v1275_v6  ;;  %v388_v43 = vpop.f32.mrb[9].mxu0 }
  0xf1   :  { %v554_v42 = vadd.f32 %v938_v40, %v1275_v6  ;;  %v548_v44 = vpop.f32.mrb[9].mxu1  ;;  %v389_v45 = vadd.f32 %v1275_v6, %v388_v43 }
  0xf2   :  { %v549_v46 = vadd.f32 %v1275_v6, %v548_v44  ;;  %676 = vst.msk [vmem:[%s1600_s3 + $0x48] sm:$0xff] %vm89_vm0, %v394_v41 }
  0xf3   :  { %708 = vst.msk [vmem:[%s1600_s3 + $0x148] sm:$0xff] %vm89_vm0, %v554_v42  ;;  %675 = vst.msk [vmem:[%s1600_s3 + $0x40] sm:$0xff] %vm89_vm0, %v389_v45  ;;  %v893_v47 = vpop.f32.mrb[10].mxu0 }
  0xf4   :  { %707 = vst.msk [vmem:[%s1600_s3 + $0x140] sm:$0xff] %vm89_vm0, %v549_v46  ;;  %v941_v48 = vpop.f32.mrb[10].mxu1  ;;  %v404_v49 = vadd.f32 %v893_v47, %v1275_v6  ;;  %v398_v51 = vpop.f32.mrb[11].mxu0 }
  0xf5   :  { %v564_v50 = vadd.f32 %v941_v48, %v1275_v6  ;;  %v558_v52 = vpop.f32.mrb[11].mxu1  ;;  %v399_v53 = vadd.f32 %v1275_v6, %v398_v51 }
  0xf6   :  { %v559_v54 = vadd.f32 %v1275_v6, %v558_v52  ;;  %678 = vst.msk [vmem:[%s1600_s3 + $0x58] sm:$0xff] %vm89_vm0, %v404_v49 }
  0xf7   :  { %710 = vst.msk [vmem:[%s1600_s3 + $0x158] sm:$0xff] %vm89_vm0, %v564_v50  ;;  %677 = vst.msk [vmem:[%s1600_s3 + $0x50] sm:$0xff] %vm89_vm0, %v399_v53  ;;  %v896_v55 = vpop.f32.mrb[12].mxu0 }
  0xf8   :  { %709 = vst.msk [vmem:[%s1600_s3 + $0x150] sm:$0xff] %vm89_vm0, %v559_v54  ;;  %v944_v56 = vpop.f32.mrb[12].mxu1  ;;  %v414_v57 = vadd.f32 %v896_v55, %v1275_v6  ;;  %v408_v59 = vpop.f32.mrb[13].mxu0 }
  0xf9   :  { %v574_v58 = vadd.f32 %v944_v56, %v1275_v6  ;;  %v568_v60 = vpop.f32.mrb[13].mxu1  ;;  %v409_v61 = vadd.f32 %v1275_v6, %v408_v59 }
  0xfa   :  { %v569_v62 = vadd.f32 %v1275_v6, %v568_v60  ;;  %680 = vst.msk [vmem:[%s1600_s3 + $0x68] sm:$0xff] %vm89_vm0, %v414_v57 }
  0xfb   :  { %712 = vst.msk [vmem:[%s1600_s3 + $0x168] sm:$0xff] %vm89_vm0, %v574_v58  ;;  %679 = vst.msk [vmem:[%s1600_s3 + $0x60] sm:$0xff] %vm89_vm0, %v409_v61  ;;  %v899_v63 = vpop.f32.mrb[14].mxu0 }
  0xfc   :  { %711 = vst.msk [vmem:[%s1600_s3 + $0x160] sm:$0xff] %vm89_vm0, %v569_v62  ;;  %v947_v0 = vpop.f32.mrb[14].mxu1  ;;  %v424_v1 = vadd.f32 %v899_v63, %v1275_v6  ;;  %v418_v3 = vpop.f32.mrb[15].mxu0 }
  0xfd   :  { %v584_v2 = vadd.f32 %v947_v0, %v1275_v6  ;;  %v578_v4 = vpop.f32.mrb[15].mxu1  ;;  %v419_v5 = vadd.f32 %v1275_v6, %v418_v3 }
  0xfe   :  { %v579_v7 = vadd.f32 %v1275_v6, %v578_v4  ;;  %682 = vst.msk [vmem:[%s1600_s3 + $0x78] sm:$0xff] %vm89_vm0, %v424_v1 }
  0xff   :  { %714 = vst.msk [vmem:[%s1600_s3 + $0x178] sm:$0xff] %vm89_vm0, %v584_v2  ;;  %681 = vst.msk [vmem:[%s1600_s3 + $0x70] sm:$0xff] %vm89_vm0, %v419_v5  ;;  %v902_v8 = vpop.f32.mrb[16].mxu0 }
 0x100   :  { %713 = vst.msk [vmem:[%s1600_s3 + $0x170] sm:$0xff] %vm89_vm0, %v579_v7  ;;  %v950_v9 = vpop.f32.mrb[16].mxu1  ;;  %v434_v10 = vadd.f32 %v902_v8, %v1275_v6  ;;  %v428_v12 = vpop.f32.mrb[17].mxu0 }
 0x101   :  { %v594_v11 = vadd.f32 %v950_v9, %v1275_v6  ;;  %v588_v13 = vpop.f32.mrb[17].mxu1  ;;  %v429_v14 = vadd.f32 %v1275_v6, %v428_v12 }
 0x102   :  { %v589_v15 = vadd.f32 %v1275_v6, %v588_v13  ;;  %684 = vst.msk [vmem:[%s1600_s3 + $0x88] sm:$0xff] %vm89_vm0, %v434_v10 }
 0x103   :  { %716 = vst.msk [vmem:[%s1600_s3 + $0x188] sm:$0xff] %vm89_vm0, %v594_v11  ;;  %683 = vst.msk [vmem:[%s1600_s3 + $0x80] sm:$0xff] %vm89_vm0, %v429_v14  ;;  %v905_v16 = vpop.f32.mrb[18].mxu0 }
 0x104   :  { %715 = vst.msk [vmem:[%s1600_s3 + $0x180] sm:$0xff] %vm89_vm0, %v589_v15  ;;  %v953_v17 = vpop.f32.mrb[18].mxu1  ;;  %v444_v18 = vadd.f32 %v905_v16, %v1275_v6  ;;  %v438_v20 = vpop.f32.mrb[19].mxu0 }
 0x105   :  { %v604_v19 = vadd.f32 %v953_v17, %v1275_v6  ;;  %v598_v21 = vpop.f32.mrb[19].mxu1  ;;  %v439_v22 = vadd.f32 %v1275_v6, %v438_v20 }
 0x106   :  { %v599_v23 = vadd.f32 %v1275_v6, %v598_v21  ;;  %686 = vst.msk [vmem:[%s1600_s3 + $0x98] sm:$0xff] %vm89_vm0, %v444_v18 }
 0x107   :  { %718 = vst.msk [vmem:[%s1600_s3 + $0x198] sm:$0xff] %vm89_vm0, %v604_v19  ;;  %685 = vst.msk [vmem:[%s1600_s3 + $0x90] sm:$0xff] %vm89_vm0, %v439_v22  ;;  %v908_v24 = vpop.f32.mrb[20].mxu0 }
 0x108   :  { %717 = vst.msk [vmem:[%s1600_s3 + $0x190] sm:$0xff] %vm89_vm0, %v599_v23  ;;  %v956_v25 = vpop.f32.mrb[20].mxu1  ;;  %v454_v26 = vadd.f32 %v908_v24, %v1275_v6  ;;  %v448_v28 = vpop.f32.mrb[21].mxu0 }
 0x109   :  { %v614_v27 = vadd.f32 %v956_v25, %v1275_v6  ;;  %v608_v29 = vpop.f32.mrb[21].mxu1  ;;  %v449_v30 = vadd.f32 %v1275_v6, %v448_v28 }
 0x10a   :  { %v609_v31 = vadd.f32 %v1275_v6, %v608_v29  ;;  %688 = vst.msk [vmem:[%s1600_s3 + $0xa8] sm:$0xff] %vm89_vm0, %v454_v26 }
 0x10b   :  { %720 = vst.msk [vmem:[%s1600_s3 + $0x1a8] sm:$0xff] %vm89_vm0, %v614_v27  ;;  %687 = vst.msk [vmem:[%s1600_s3 + $0xa0] sm:$0xff] %vm89_vm0, %v449_v30  ;;  %v911_v32 = vpop.f32.mrb[22].mxu0 }
 0x10c   :  { %719 = vst.msk [vmem:[%s1600_s3 + $0x1a0] sm:$0xff] %vm89_vm0, %v609_v31  ;;  %v959_v33 = vpop.f32.mrb[22].mxu1  ;;  %v464_v34 = vadd.f32 %v911_v32, %v1275_v6  ;;  %v458_v36 = vpop.f32.mrb[23].mxu0 }
 0x10d   :  { %v624_v35 = vadd.f32 %v959_v33, %v1275_v6  ;;  %v618_v37 = vpop.f32.mrb[23].mxu1  ;;  %v459_v38 = vadd.f32 %v1275_v6, %v458_v36 }
 0x10e   :  { %v619_v39 = vadd.f32 %v1275_v6, %v618_v37  ;;  %690 = vst.msk [vmem:[%s1600_s3 + $0xb8] sm:$0xff] %vm89_vm0, %v464_v34 }
 0x10f   :  { %722 = vst.msk [vmem:[%s1600_s3 + $0x1b8] sm:$0xff] %vm89_vm0, %v624_v35  ;;  %689 = vst.msk [vmem:[%s1600_s3 + $0xb0] sm:$0xff] %vm89_vm0, %v459_v38  ;;  %v914_v40 = vpop.f32.mrb[24].mxu0 }
 0x110   :  { %721 = vst.msk [vmem:[%s1600_s3 + $0x1b0] sm:$0xff] %vm89_vm0, %v619_v39  ;;  %v962_v41 = vpop.f32.mrb[24].mxu1  ;;  %v474_v42 = vadd.f32 %v914_v40, %v1275_v6  ;;  %v468_v44 = vpop.f32.mrb[25].mxu0 }
 0x111   :  { %v634_v43 = vadd.f32 %v962_v41, %v1275_v6  ;;  %v628_v45 = vpop.f32.mrb[25].mxu1  ;;  %v469_v46 = vadd.f32 %v1275_v6, %v468_v44 }
 0x112   :  { %v629_v47 = vadd.f32 %v1275_v6, %v628_v45  ;;  %692 = vst.msk [vmem:[%s1600_s3 + $0xc8] sm:$0xff] %vm89_vm0, %v474_v42 }
 0x113   :  { %724 = vst.msk [vmem:[%s1600_s3 + $0x1c8] sm:$0xff] %vm89_vm0, %v634_v43  ;;  %691 = vst.msk [vmem:[%s1600_s3 + $0xc0] sm:$0xff] %vm89_vm0, %v469_v46  ;;  %v917_v48 = vpop.f32.mrb[26].mxu0 }
 0x114   :  { %723 = vst.msk [vmem:[%s1600_s3 + $0x1c0] sm:$0xff] %vm89_vm0, %v629_v47  ;;  %v965_v49 = vpop.f32.mrb[26].mxu1  ;;  %v484_v50 = vadd.f32 %v917_v48, %v1275_v6  ;;  %v478_v52 = vpop.f32.mrb[27].mxu0 }
 0x115   :  { %v644_v51 = vadd.f32 %v965_v49, %v1275_v6  ;;  %v638_v53 = vpop.f32.mrb[27].mxu1  ;;  %v479_v54 = vadd.f32 %v1275_v6, %v478_v52 }
 0x116   :  { %v639_v55 = vadd.f32 %v1275_v6, %v638_v53  ;;  %694 = vst.msk [vmem:[%s1600_s3 + $0xd8] sm:$0xff] %vm89_vm0, %v484_v50 }
 0x117   :  { %726 = vst.msk [vmem:[%s1600_s3 + $0x1d8] sm:$0xff] %vm89_vm0, %v644_v51  ;;  %693 = vst.msk [vmem:[%s1600_s3 + $0xd0] sm:$0xff] %vm89_vm0, %v479_v54  ;;  %v920_v56 = vpop.f32.mrb[28].mxu0 }
 0x118   :  { %725 = vst.msk [vmem:[%s1600_s3 + $0x1d0] sm:$0xff] %vm89_vm0, %v639_v55  ;;  %v968_v57 = vpop.f32.mrb[28].mxu1  ;;  %v494_v58 = vadd.f32 %v920_v56, %v1275_v6  ;;  %v488_v60 = vpop.f32.mrb[29].mxu0 }
 0x119   :  { %v654_v59 = vadd.f32 %v968_v57, %v1275_v6  ;;  %v648_v61 = vpop.f32.mrb[29].mxu1  ;;  %v489_v62 = vadd.f32 %v1275_v6, %v488_v60 }
 0x11a   :  { %v649_v63 = vadd.f32 %v1275_v6, %v648_v61  ;;  %696 = vst.msk [vmem:[%s1600_s3 + $0xe8] sm:$0xff] %vm89_vm0, %v494_v58 }
 0x11b   :  { %728 = vst.msk [vmem:[%s1600_s3 + $0x1e8] sm:$0xff] %vm89_vm0, %v654_v59  ;;  %695 = vst.msk [vmem:[%s1600_s3 + $0xe0] sm:$0xff] %vm89_vm0, %v489_v62  ;;  %v923_v0 = vpop.f32.mrb[30].mxu0 }
 0x11c   :  { %727 = vst.msk [vmem:[%s1600_s3 + $0x1e0] sm:$0xff] %vm89_vm0, %v649_v63  ;;  %v971_v1 = vpop.f32.mrb[30].mxu1  ;;  %v504_v2 = vadd.f32 %v923_v0, %v1275_v6  ;;  %v498_v4 = vpop.f32.mrb[31].mxu0 }
 0x11d   :  { %v664_v3 = vadd.f32 %v971_v1, %v1275_v6  ;;  %v658_v5 = vpop.f32.mrb[31].mxu1  ;;  %v499_v7 = vadd.f32 %v1275_v6, %v498_v4 }
 0x11e   :  { %v659_v8 = vadd.f32 %v1275_v6, %v658_v5  ;;  %698 = vst.msk [vmem:[%s1600_s3 + $0xf8] sm:$0xff] %vm89_vm0, %v504_v2 }
 0x11f   :  { %730 = vst.msk [vmem:[%s1600_s3 + $0x1f8] sm:$0xff] %vm89_vm0, %v664_v3  ;;  %697 = vst.msk [vmem:[%s1600_s3 + $0xf0] sm:$0xff] %vm89_vm0, %v499_v7 }
 0x120   :  { %729 = vst.msk [vmem:[%s1600_s3 + $0x1f0] sm:$0xff] %vm89_vm0, %v659_v8 }

</bundles_post_ra>
